<compile_context>
chip_gen: v7x
topology: tpu7x:2x2x1
jax: 0.10.0
libtpu: 0.0.40
codegen_flags: <defaults>
</compile_context>

<pallas_src>
import functools

import jax
import jax.numpy as jnp
from jax.experimental import pallas as pl
from jax.experimental.pallas import tpu as pltpu

LN_EPS = 1e-5   # torch.nn.LayerNorm default
LANES = 128     # TPU vreg lane width
SUBLANES = 8    # f32 sublane tile


def _round_up(n, m):
    return ((n + m - 1) // m) * m


def _cdiv(a, b):
    return (a + b - 1) // b


def _ln_relu(h, gamma, beta, inv_h, lane_mask):
    """Fused LayerNorm + ReLU (f32), two-pass statistics over the TRUE width.

    Padded lanes of `h` are exactly zero by construction (zero-padded weights
    and bias), so the raw sum over the padded width equals the sum over the
    true hidden width.  The centered values on padded lanes would be `-mean`,
    so they are masked out of the variance.  gamma/beta are zero on padded
    lanes, so padded lanes stay exactly zero on output.
    """
    mean = jnp.sum(h, axis=-1, keepdims=True) * inv_h
    centered = h - mean
    if lane_mask is not None:
        centered = jnp.where(lane_mask, centered, 0.0)
    var = jnp.sum(centered * centered, axis=-1, keepdims=True) * inv_h
    h_hat = centered * jax.lax.rsqrt(var + LN_EPS)
    return jnp.maximum(h_hat * gamma + beta, 0.0)


def _mlp_decoder_kernel(
    x_ref,
    w1_ref, b1_ref, g1_ref, be1_ref,
    w2_ref, b2_ref, g2_ref, be2_ref,
    w3_ref, b3_ref,
    logits_ref, hidden_ref,
    *, hidden_true,
):
    cdt = w1_ref.dtype                 # MXU operand dtype (bf16 or f32)
    inv_h = 1.0 / hidden_true          # true hidden width (not lane-padded)
    hp = w1_ref.shape[1]

    if hp == hidden_true:
        lane_mask = None
    else:
        lane_mask = jax.lax.broadcasted_iota(jnp.int32, (1, hp), 1) < hidden_true

    # Cast x in-kernel (VPU, hidden under MXU/DMA) instead of a wrapper copy.
    x = x_ref[...].astype(cdt)

    # Linear(input_dim -> hidden) + LayerNorm + ReLU   (f32 accumulation)
    h = jnp.dot(x, w1_ref[...], preferred_element_type=jnp.float32) + b1_ref[...]
    h = _ln_relu(h, g1_ref[...], be1_ref[...], inv_h, lane_mask)

    # Linear(hidden -> hidden) + LayerNorm + ReLU
    h2 = jnp.dot(h.astype(cdt), w2_ref[...], preferred_element_type=jnp.float32)
    h2 = h2 + b2_ref[...]
    h2 = _ln_relu(h2, g2_ref[...], be2_ref[...], inv_h, lane_mask)

    hidden_ref[...] = h2.astype(hidden_ref.dtype)

    # Final Linear(hidden -> output_dim)
    logits = jnp.dot(h2.astype(cdt), w3_ref[...], preferred_element_type=jnp.float32)
    logits = logits + b3_ref[...]
    logits_ref[...] = logits.astype(logits_ref.dtype)


def prepare_params(params, compute_dtype=jnp.bfloat16):
    """One-time prep: zero-pad feature dims to lane width, cast MXU operands.

    Matmul weights -> compute_dtype (bf16 recommended on v5e/v6e/v7x: the MXU
    is bf16-native on all three; f32 operands force a slower multi-pass
    matmul).  Biases / gamma / beta stay f32 since they are applied after the
    f32 accumulation.
    """
    input_dim, hidden = params["w1"].shape
    output_dim = params["w3"].shape[1]
    # Only pad the hidden width to the full 256-wide MXU when it is large
    # enough to be compute-bound; small widths keep 128 to avoid inflating
    # LN work and HBM writeback.
    lane_mult = 256 if hidden >= 1024 else LANES
    hp = _round_up(hidden, lane_mult)
    op = _round_up(output_dim, LANES)

    def pad_cols(a, to_c):
        return jnp.pad(a, ((0, 0), (0, to_c - a.shape[1])))

    def pad_both(a, to_r, to_c):
        return jnp.pad(a, ((0, to_r - a.shape[0]), (0, to_c - a.shape[1])))

    # TODO(synk): if input_dim is not 128-aligned, pad x's feature dim at the
    # producer (not here: an extra HBM copy of x costs more than it saves) and
    # zero-pad w1's rows to match for a lane-dense x tile / 128-aligned K.
    return dict(
        w1=pad_cols(params["w1"], hp).astype(compute_dtype),
        b1=pad_cols(params["b1"], hp).astype(jnp.float32),
        g1=pad_cols(params["g1"], hp).astype(jnp.float32),
        be1=pad_cols(params["be1"], hp).astype(jnp.float32),
        w2=pad_both(params["w2"], hp, hp).astype(compute_dtype),
        b2=pad_cols(params["b2"], hp).astype(jnp.float32),
        g2=pad_cols(params["g2"], hp).astype(jnp.float32),
        be2=pad_cols(params["be2"], hp).astype(jnp.float32),
        w3=pad_both(params["w3"], hp, op).astype(compute_dtype),
        b3=pad_cols(params["b3"], op).astype(jnp.float32),
    )


@functools.partial(
    jax.jit,
    static_argnames=("hidden", "output_dim", "logits_dtype", "hidden_dtype"))
def mlp_decoder_forward(x, prepped, *, hidden, output_dim,
                        logits_dtype=jnp.float32, hidden_dtype=jnp.float32):
    """Returns (logits, hidden_state) exactly like MlpDecoder.forward (minus the None)."""
    B, input_dim = x.shape
    hp = prepped["w1"].shape[1]   # lane-padded hidden
    op = prepped["w3"].shape[1]   # lane-padded output_dim

    # Row alignment: 8 sublanes for f32; 16 if any streamed array is 2-byte.
    min_itemsize = min(jnp.dtype(x.dtype).itemsize,
                       jnp.dtype(logits_dtype).itemsize,
                       jnp.dtype(hidden_dtype).itemsize)
    row_align = SUBLANES * max(1, 4 // max(min_itemsize, 1))

    # VMEM-aware row-tile cap: keep the (double-buffered) x block <= ~8 MiB
    # per buffer so the 2-deep pipeline fits v7x's default scoped VMEM.
    x_row_bytes = input_dim * jnp.dtype(x.dtype).itemsize
    block_b_max = max(row_align,
                      ((8 << 20) // max(x_row_bytes, 1)) // row_align * row_align)
    block_b_max = min(block_b_max, 512)

    b_pad = _round_up(max(B, row_align), row_align)
    if b_pad >= 2 * row_align:
        # >=2 grid steps whenever splittable so the "parallel" axis can feed
        # both v7x TensorCores (grid=(1,) leaves one TC idle).
        target_steps = max(2, _cdiv(b_pad, block_b_max))
        block_b = min(_round_up(_cdiv(b_pad, target_steps), row_align), block_b_max)
        b_pad = _round_up(b_pad, block_b)
    else:
        block_b = b_pad

    # No dtype cast here; pad only when B is not already row-aligned.
    xp = x if b_pad == B else jnp.pad(x, ((0, b_pad - B), (0, 0)))

    grid = (b_pad // block_b,)

    def row_map(i):
        return (i, 0)

    def rep_map(i):
        return (0, 0)

    # Constant-indexed parameter blocks: whole-array, single-buffered (the
    # second pipeline buffer would never be used).
    weight_keys = ("w1", "b1", "g1", "be1", "w2", "b2", "g2", "be2", "w3", "b3")
    weight_specs = [
        pl.BlockSpec(prepped[k].shape, rep_map, pipeline_mode=pl.Buffered(1))
        for k in weight_keys
    ]

    # Explicit VMEM budget: single-buffered params + double-buffered streams.
    param_bytes = sum(int(prepped[k].size) * jnp.dtype(prepped[k].dtype).itemsize
                      for k in weight_keys)
    stream_bytes = 2 * block_b * (
        input_dim * jnp.dtype(x.dtype).itemsize
        + op * jnp.dtype(logits_dtype).itemsize
        + hp * jnp.dtype(hidden_dtype).itemsize)
    vmem_limit = int(min(max(2 * (param_bytes + stream_bytes), 32 << 20), 48 << 20))

    kernel = functools.partial(_mlp_decoder_kernel, hidden_true=hidden)

    logits_p, hidden_p = pl.pallas_call(
        kernel,
        out_shape=(
            jax.ShapeDtypeStruct((b_pad, op), logits_dtype),
            jax.ShapeDtypeStruct((b_pad, hp), hidden_dtype),
        ),
        grid_spec=pltpu.PrefetchScalarGridSpec(
            num_scalar_prefetch=0,
            grid=grid,
            in_specs=[pl.BlockSpec((block_b, input_dim), row_map)] + weight_specs,
            out_specs=[
                pl.BlockSpec((block_b, op), row_map),
                pl.BlockSpec((block_b, hp), row_map),
            ],
        ),
        compiler_params=pltpu.CompilerParams(
            dimension_semantics=("parallel",),
            vmem_limit_bytes=vmem_limit,
        ),
    )(xp, *[prepped[k] for k in weight_keys])

    # Slice back to true batch / feature widths (lane-dense inside the kernel).
    return logits_p[:B, :output_dim], hidden_p[:B, :hidden]


def init_params(key, input_dim, hidden, output_dim):
    """Deterministic synthetic parameters matching MlpDecoder.__init__ shapes.

    Linear weights stored transposed: [in_features, out_features].
    """
    ks = jax.random.split(key, 4)
    # proj[0] = Linear(input_dim, hidden)
    w1 = jax.random.normal(ks[0], (input_dim, hidden), jnp.float32) * 0.05
    b1 = jax.random.normal(ks[1], (1, hidden), jnp.float32) * 0.01
    # proj[1] = LayerNorm(hidden): gamma=1, beta=0 (torch default init)
    g1 = jnp.ones((1, hidden), jnp.float32)
    be1 = jnp.zeros((1, hidden), jnp.float32)
    # proj[3] = Linear(hidden, hidden)
    w2 = jax.random.normal(ks[2], (hidden, hidden), jnp.float32) * 0.05
    b2 = jax.random.normal(ks[3], (1, hidden), jnp.float32) * 0.01
    # proj[4] = LayerNorm(hidden)
    g2 = jnp.ones((1, hidden), jnp.float32)
    be2 = jnp.zeros((1, hidden), jnp.float32)
    # self.linear = Linear(hidden, output_dim), orthogonal init gain=0.01, bias 0
    ortho = jax.nn.initializers.orthogonal(scale=0.01)
    w3 = ortho(jax.random.PRNGKey(42), (hidden, output_dim), jnp.float32)
    b3 = jnp.zeros((1, output_dim), jnp.float32)
    return dict(w1=w1, b1=b1, g1=g1, be1=be1,
                w2=w2, b2=b2, g2=g2, be2=be2,
                w3=w3, b3=b3)


def reference_forward(x, p):
    """Pure-JAX f32 reference mirroring the PyTorch forward."""
    def ln(h, g, b):
        m = jnp.mean(h, axis=-1, keepdims=True)
        v = jnp.mean(jnp.square(h - m), axis=-1, keepdims=True)
        return (h - m) / jnp.sqrt(v + LN_EPS) * g + b

    h = x @ p["w1"] + p["b1"]
    h = jnp.maximum(ln(h, p["g1"], p["be1"]), 0.0)
    h = h @ p["w2"] + p["b2"]
    h = jnp.maximum(ln(h, p["g2"], p["be2"]), 0.0)
    logits = h @ p["w3"] + p["b3"]
    return logits, h


if __name__ == "__main__":
    B = 16          # batch (e.g. flattened [batch, seq])
    INPUT_DIM = 32  # LLM hidden-state dim fed to the decoder
    HIDDEN = 32     # decoder hidden_size
    OUTPUT_DIM = 16 # discrete action count (non-Box action_space)

    key = jax.random.PRNGKey(0)
    k_x, k_p = jax.random.split(key)
    x = jax.random.normal(k_x, (B, INPUT_DIM), jnp.float32)
    params = init_params(k_p, INPUT_DIM, HIDDEN, OUTPUT_DIM)

    ref_logits, ref_hidden = reference_forward(x, params)

    # --- f32 operand path (tolerance-faithful to the PyTorch f32 numerics) ---
    prepped_f32 = prepare_params(params, compute_dtype=jnp.float32)
    logits32, hidden32 = mlp_decoder_forward(
        x, prepped_f32, hidden=HIDDEN, output_dim=OUTPUT_DIM)
    jax.block_until_ready((logits32, hidden32))
    assert logits32.shape == (B, OUTPUT_DIM) and hidden32.shape == (B, HIDDEN)
    assert jnp.allclose(logits32, ref_logits, atol=1e-4, rtol=1e-4)
    assert jnp.allclose(hidden32, ref_hidden, atol=1e-4, rtol=1e-4)

    # --- bf16 MXU-operand path (recommended on v5e/v6e/v7x), f32 accumulation.
    # x is cast to bf16 inside the kernel, so input precision is reduced vs.
    # the f32 PyTorch reference (covered by the 5e-2 tolerance below).  The
    # hidden writeback is emitted as bf16 to halve the largest HBM store.
    prepped_bf16 = prepare_params(params, compute_dtype=jnp.bfloat16)
    logits16, hidden16 = mlp_decoder_forward(
        x, prepped_bf16, hidden=HIDDEN, output_dim=OUTPUT_DIM,
        logits_dtype=jnp.float32, hidden_dtype=jnp.bfloat16)
    jax.block_until_ready((logits16, hidden16))
    assert logits16.shape == (B, OUTPUT_DIM) and hidden16.shape == (B, HIDDEN)
    assert jnp.allclose(logits16, ref_logits, atol=5e-2, rtol=5e-2)
    assert jnp.allclose(hidden16.astype(jnp.float32), ref_hidden, atol=5e-2, rtol=5e-2)

    # TODO(synk): FixedCategorical / get_distrib sampling and embed_action
    # (nn.Embedding lookup) are distribution/embedding glue outside forward();
    # not part of the kernel.
    print("KERNEL_OK")
</pallas_src>

<mosaic_0001>
module attributes {stable_mosaic.version = 11 : i64} {
  func.func @_mlp_decoder_kernel(%arg0: i32, %arg1: memref<8x32xf32, #tpu.memory_space<vmem>>, %arg2: memref<32x128xf32, #tpu.memory_space<vmem>>, %arg3: memref<1x128xf32, #tpu.memory_space<vmem>>, %arg4: memref<1x128xf32, #tpu.memory_space<vmem>>, %arg5: memref<1x128xf32, #tpu.memory_space<vmem>>, %arg6: memref<128x128xf32, #tpu.memory_space<vmem>>, %arg7: memref<1x128xf32, #tpu.memory_space<vmem>>, %arg8: memref<1x128xf32, #tpu.memory_space<vmem>>, %arg9: memref<1x128xf32, #tpu.memory_space<vmem>>, %arg10: memref<128x128xf32, #tpu.memory_space<vmem>>, %arg11: memref<1x128xf32, #tpu.memory_space<vmem>>, %arg12: memref<8x128xf32, #tpu.memory_space<vmem>>, %arg13: memref<8x128xf32, #tpu.memory_space<vmem>>) attributes {dimension_semantics = [#tpu.dimension_semantics<parallel>], iteration_bounds = array<i64: 2>, scalar_prefetch = 0 : i64, scratch_operands = 0 : i64, tpu.core_type = #tpu.core_type<tc>, window_params = [{transform_indices = @transform_0, window_bounds = array<i64: 8, 32>}, {pipeline_mode = #tpu.pipeline_mode<synchronous>, transform_indices = @transform_1, window_bounds = array<i64: 32, 128>}, {pipeline_mode = #tpu.pipeline_mode<synchronous>, transform_indices = @transform_2, window_bounds = array<i64: 1, 128>}, {pipeline_mode = #tpu.pipeline_mode<synchronous>, transform_indices = @transform_3, window_bounds = array<i64: 1, 128>}, {pipeline_mode = #tpu.pipeline_mode<synchronous>, transform_indices = @transform_4, window_bounds = array<i64: 1, 128>}, {pipeline_mode = #tpu.pipeline_mode<synchronous>, transform_indices = @transform_5, window_bounds = array<i64: 128, 128>}, {pipeline_mode = #tpu.pipeline_mode<synchronous>, transform_indices = @transform_6, window_bounds = array<i64: 1, 128>}, {pipeline_mode = #tpu.pipeline_mode<synchronous>, transform_indices = @transform_7, window_bounds = array<i64: 1, 128>}, {pipeline_mode = #tpu.pipeline_mode<synchronous>, transform_indices = @transform_8, window_bounds = array<i64: 1, 128>}, {pipeline_mode = #tpu.pipeline_mode<synchronous>, transform_indices = @transform_9, window_bounds = array<i64: 128, 128>}, {pipeline_mode = #tpu.pipeline_mode<synchronous>, transform_indices = @transform_10, window_bounds = array<i64: 1, 128>}, {transform_indices = @transform_11, window_bounds = array<i64: 8, 128>}, {transform_indices = @transform_12, window_bounds = array<i64: 8, 128>}]} {
    %0 = tpu.iota {dimensions = array<i32: 1>} : vector<1x128xi32>
    %c32_i32 = arith.constant 32 : i32
    %1 = vector.broadcast %c32_i32 : i32 to vector<1x128xi32>
    %2 = arith.cmpi slt, %0, %1 : vector<1x128xi32>
    %c0 = arith.constant 0 : index
    %c0_0 = arith.constant 0 : index
    %3 = vector.load %arg1[%c0, %c0_0] : memref<8x32xf32, #tpu.memory_space<vmem>>, vector<8x32xf32>
    %c0_1 = arith.constant 0 : index
    %c0_2 = arith.constant 0 : index
    %4 = vector.load %arg2[%c0_1, %c0_2] : memref<32x128xf32, #tpu.memory_space<vmem>>, vector<32x128xf32>
    %cst = arith.constant dense<0.000000e+00> : vector<8x128xf32>
    %5 = tpu.matmul %3, %4, %cst {dimension_numbers = #tpu.dot_dimension_numbers<[1], [0], [0], [1], [0, 0, 1, 1], [], []>} : vector<8x32xf32>, vector<32x128xf32>, vector<8x128xf32> -> vector<8x128xf32>
    %c0_3 = arith.constant 0 : index
    %c0_4 = arith.constant 0 : index
    %6 = vector.load %arg3[%c0_3, %c0_4] : memref<1x128xf32, #tpu.memory_space<vmem>>, vector<1x128xf32>
    %7 = vector.broadcast %6 : vector<1x128xf32> to vector<8x128xf32>
    %8 = arith.addf %5, %7 : vector<8x128xf32>
    %c0_5 = arith.constant 0 : index
    %c0_6 = arith.constant 0 : index
    %9 = vector.load %arg4[%c0_5, %c0_6] : memref<1x128xf32, #tpu.memory_space<vmem>>, vector<1x128xf32>
    %c0_7 = arith.constant 0 : index
    %c0_8 = arith.constant 0 : index
    %10 = vector.load %arg5[%c0_7, %c0_8] : memref<1x128xf32, #tpu.memory_space<vmem>>, vector<1x128xf32>
    %cst_9 = arith.constant dense<0.000000e+00> : vector<8xf32>
    %11 = vector.multi_reduction <add>, %8, %cst_9 [1] : vector<8x128xf32> to vector<8xf32>
    %12 = vector.shape_cast %11 : vector<8xf32> to vector<8x1xf32>
    %cst_10 = arith.constant 3.125000e-02 : f32
    %13 = vector.broadcast %cst_10 : f32 to vector<8x1xf32>
    %14 = arith.mulf %12, %13 : vector<8x1xf32>
    %15 = vector.broadcast %14 : vector<8x1xf32> to vector<8x128xf32>
    %16 = arith.subf %8, %15 : vector<8x128xf32>
    %cst_11 = arith.constant 0.000000e+00 : f32
    %17 = vector.shape_cast %2 : vector<1x128xi1> to vector<1x128xi1>
    %18 = vector.broadcast %17 : vector<1x128xi1> to vector<8x128xi1>
    %19 = vector.broadcast %cst_11 : f32 to vector<8x128xf32>
    %20 = arith.select %18, %16, %19 : vector<8x128xi1>, vector<8x128xf32>
    %21 = arith.mulf %20, %20 : vector<8x128xf32>
    %cst_12 = arith.constant dense<0.000000e+00> : vector<8xf32>
    %22 = vector.multi_reduction <add>, %21, %cst_12 [1] : vector<8x128xf32> to vector<8xf32>
    %23 = vector.shape_cast %22 : vector<8xf32> to vector<8x1xf32>
    %cst_13 = arith.constant 3.125000e-02 : f32
    %24 = vector.broadcast %cst_13 : f32 to vector<8x1xf32>
    %25 = arith.mulf %23, %24 : vector<8x1xf32>
    %cst_14 = arith.constant 9.99999974E-6 : f32
    %26 = vector.broadcast %cst_14 : f32 to vector<8x1xf32>
    %27 = arith.addf %25, %26 : vector<8x1xf32>
    %28 = math.rsqrt %27 : vector<8x1xf32>
    %29 = vector.broadcast %28 : vector<8x1xf32> to vector<8x128xf32>
    %30 = arith.mulf %20, %29 : vector<8x128xf32>
    %31 = vector.broadcast %9 : vector<1x128xf32> to vector<8x128xf32>
    %32 = arith.mulf %30, %31 : vector<8x128xf32>
    %33 = vector.broadcast %10 : vector<1x128xf32> to vector<8x128xf32>
    %34 = arith.addf %32, %33 : vector<8x128xf32>
    %cst_15 = arith.constant 0.000000e+00 : f32
    %35 = vector.broadcast %cst_15 : f32 to vector<8x128xf32>
    %36 = arith.maximumf %34, %35 : vector<8x128xf32>
    %c0_16 = arith.constant 0 : index
    %c0_17 = arith.constant 0 : index
    %37 = vector.load %arg6[%c0_16, %c0_17] : memref<128x128xf32, #tpu.memory_space<vmem>>, vector<128x128xf32>
    %cst_18 = arith.constant dense<0.000000e+00> : vector<8x128xf32>
    %38 = tpu.matmul %36, %37, %cst_18 {dimension_numbers = #tpu.dot_dimension_numbers<[1], [0], [0], [1], [0, 0, 1, 1], [], []>} : vector<8x128xf32>, vector<128x128xf32>, vector<8x128xf32> -> vector<8x128xf32>
    %c0_19 = arith.constant 0 : index
    %c0_20 = arith.constant 0 : index
    %39 = vector.load %arg7[%c0_19, %c0_20] : memref<1x128xf32, #tpu.memory_space<vmem>>, vector<1x128xf32>
    %40 = vector.broadcast %39 : vector<1x128xf32> to vector<8x128xf32>
    %41 = arith.addf %38, %40 : vector<8x128xf32>
    %c0_21 = arith.constant 0 : index
    %c0_22 = arith.constant 0 : index
    %42 = vector.load %arg8[%c0_21, %c0_22] : memref<1x128xf32, #tpu.memory_space<vmem>>, vector<1x128xf32>
    %c0_23 = arith.constant 0 : index
    %c0_24 = arith.constant 0 : index
    %43 = vector.load %arg9[%c0_23, %c0_24] : memref<1x128xf32, #tpu.memory_space<vmem>>, vector<1x128xf32>
    %cst_25 = arith.constant dense<0.000000e+00> : vector<8xf32>
    %44 = vector.multi_reduction <add>, %41, %cst_25 [1] : vector<8x128xf32> to vector<8xf32>
    %45 = vector.shape_cast %44 : vector<8xf32> to vector<8x1xf32>
    %cst_26 = arith.constant 3.125000e-02 : f32
    %46 = vector.broadcast %cst_26 : f32 to vector<8x1xf32>
    %47 = arith.mulf %45, %46 : vector<8x1xf32>
    %48 = vector.broadcast %47 : vector<8x1xf32> to vector<8x128xf32>
    %49 = arith.subf %41, %48 : vector<8x128xf32>
    %cst_27 = arith.constant 0.000000e+00 : f32
    %50 = vector.shape_cast %2 : vector<1x128xi1> to vector<1x128xi1>
    %51 = vector.broadcast %50 : vector<1x128xi1> to vector<8x128xi1>
    %52 = vector.broadcast %cst_27 : f32 to vector<8x128xf32>
    %53 = arith.select %51, %49, %52 : vector<8x128xi1>, vector<8x128xf32>
    %54 = arith.mulf %53, %53 : vector<8x128xf32>
    %cst_28 = arith.constant dense<0.000000e+00> : vector<8xf32>
    %55 = vector.multi_reduction <add>, %54, %cst_28 [1] : vector<8x128xf32> to vector<8xf32>
    %56 = vector.shape_cast %55 : vector<8xf32> to vector<8x1xf32>
    %cst_29 = arith.constant 3.125000e-02 : f32
    %57 = vector.broadcast %cst_29 : f32 to vector<8x1xf32>
    %58 = arith.mulf %56, %57 : vector<8x1xf32>
    %cst_30 = arith.constant 9.99999974E-6 : f32
    %59 = vector.broadcast %cst_30 : f32 to vector<8x1xf32>
    %60 = arith.addf %58, %59 : vector<8x1xf32>
    %61 = math.rsqrt %60 : vector<8x1xf32>
    %62 = vector.broadcast %61 : vector<8x1xf32> to vector<8x128xf32>
    %63 = arith.mulf %53, %62 : vector<8x128xf32>
    %64 = vector.broadcast %42 : vector<1x128xf32> to vector<8x128xf32>
    %65 = arith.mulf %63, %64 : vector<8x128xf32>
    %66 = vector.broadcast %43 : vector<1x128xf32> to vector<8x128xf32>
    %67 = arith.addf %65, %66 : vector<8x128xf32>
    %cst_31 = arith.constant 0.000000e+00 : f32
    %68 = vector.broadcast %cst_31 : f32 to vector<8x128xf32>
    %69 = arith.maximumf %67, %68 : vector<8x128xf32>
    %c0_32 = arith.constant 0 : index
    %c0_33 = arith.constant 0 : index
    %70 = vector.load %arg13[%c0_32, %c0_33] : memref<8x128xf32, #tpu.memory_space<vmem>>, vector<8x128xf32>
    tpu.vector_store %arg13[%c0_32, %c0_33], %69 {strides = array<i32>} : memref<8x128xf32, #tpu.memory_space<vmem>>, vector<8x128xf32>,
    %c0_34 = arith.constant 0 : index
    %c0_35 = arith.constant 0 : index
    %71 = vector.load %arg10[%c0_34, %c0_35] : memref<128x128xf32, #tpu.memory_space<vmem>>, vector<128x128xf32>
    %cst_36 = arith.constant dense<0.000000e+00> : vector<8x128xf32>
    %72 = tpu.matmul %69, %71, %cst_36 {dimension_numbers = #tpu.dot_dimension_numbers<[1], [0], [0], [1], [0, 0, 1, 1], [], []>} : vector<8x128xf32>, vector<128x128xf32>, vector<8x128xf32> -> vector<8x128xf32>
    %c0_37 = arith.constant 0 : index
    %c0_38 = arith.constant 0 : index
    %73 = vector.load %arg11[%c0_37, %c0_38] : memref<1x128xf32, #tpu.memory_space<vmem>>, vector<1x128xf32>
    %74 = vector.broadcast %73 : vector<1x128xf32> to vector<8x128xf32>
    %75 = arith.addf %72, %74 : vector<8x128xf32>
    %c0_39 = arith.constant 0 : index
    %c0_40 = arith.constant 0 : index
    %76 = vector.load %arg12[%c0_39, %c0_40] : memref<8x128xf32, #tpu.memory_space<vmem>>, vector<8x128xf32>
    tpu.vector_store %arg12[%c0_39, %c0_40], %75 {strides = array<i32>} : memref<8x128xf32, #tpu.memory_space<vmem>>, vector<8x128xf32>,
    return
  }
  func.func @transform_0(%arg0: i32) -> (i32, i32) {
    %c0_i32 = arith.constant 0 : i32
    %c0_i32_0 = arith.constant 0 : i32
    return %arg0, %c0_i32 : i32, i32
  }
  func.func @transform_1(%arg0: i32) -> (i32, i32) {
    %c0_i32 = arith.constant 0 : i32
    %c0_i32_0 = arith.constant 0 : i32
    %c0_i32_1 = arith.constant 0 : i32
    return %c0_i32, %c0_i32_0 : i32, i32
  }
  func.func @transform_2(%arg0: i32) -> (i32, i32) {
    %c0_i32 = arith.constant 0 : i32
    %c0_i32_0 = arith.constant 0 : i32
    %c0_i32_1 = arith.constant 0 : i32
    return %c0_i32, %c0_i32_0 : i32, i32
  }
  func.func @transform_3(%arg0: i32) -> (i32, i32) {
    %c0_i32 = arith.constant 0 : i32
    %c0_i32_0 = arith.constant 0 : i32
    %c0_i32_1 = arith.constant 0 : i32
    return %c0_i32, %c0_i32_0 : i32, i32
  }
  func.func @transform_4(%arg0: i32) -> (i32, i32) {
    %c0_i32 = arith.constant 0 : i32
    %c0_i32_0 = arith.constant 0 : i32
    %c0_i32_1 = arith.constant 0 : i32
    return %c0_i32, %c0_i32_0 : i32, i32
  }
  func.func @transform_5(%arg0: i32) -> (i32, i32) {
    %c0_i32 = arith.constant 0 : i32
    %c0_i32_0 = arith.constant 0 : i32
    %c0_i32_1 = arith.constant 0 : i32
    return %c0_i32, %c0_i32_0 : i32, i32
  }
  func.func @transform_6(%arg0: i32) -> (i32, i32) {
    %c0_i32 = arith.constant 0 : i32
    %c0_i32_0 = arith.constant 0 : i32
    %c0_i32_1 = arith.constant 0 : i32
    return %c0_i32, %c0_i32_0 : i32, i32
  }
  func.func @transform_7(%arg0: i32) -> (i32, i32) {
    %c0_i32 = arith.constant 0 : i32
    %c0_i32_0 = arith.constant 0 : i32
    %c0_i32_1 = arith.constant 0 : i32
    return %c0_i32, %c0_i32_0 : i32, i32
  }
  func.func @transform_8(%arg0: i32) -> (i32, i32) {
    %c0_i32 = arith.constant 0 : i32
    %c0_i32_0 = arith.constant 0 : i32
    %c0_i32_1 = arith.constant 0 : i32
    return %c0_i32, %c0_i32_0 : i32, i32
  }
  func.func @transform_9(%arg0: i32) -> (i32, i32) {
    %c0_i32 = arith.constant 0 : i32
    %c0_i32_0 = arith.constant 0 : i32
    %c0_i32_1 = arith.constant 0 : i32
    return %c0_i32, %c0_i32_0 : i32, i32
  }
  func.func @transform_10(%arg0: i32) -> (i32, i32) {
    %c0_i32 = arith.constant 0 : i32
    %c0_i32_0 = arith.constant 0 : i32
    %c0_i32_1 = arith.constant 0 : i32
    return %c0_i32, %c0_i32_0 : i32, i32
  }
  func.func @transform_11(%arg0: i32) -> (i32, i32) {
    %c0_i32 = arith.constant 0 : i32
    %c0_i32_0 = arith.constant 0 : i32
    return %arg0, %c0_i32 : i32, i32
  }
  func.func @transform_12(%arg0: i32) -> (i32, i32) {
    %c0_i32 = arith.constant 0 : i32
    %c0_i32_0 = arith.constant 0 : i32
    return %arg0, %c0_i32 : i32, i32
  }
}

</mosaic_0001>

<bundles_post_ra>
// kernel: mlp_decoder_forward.1
= control target key start
LH: loop header
LB: loop body
LE: loop exit
PB: predicated region body
PF: predicated region fallthrough
CT: control target
= control target key end

     0   :  { %s1920_s0 = inlined_call_operand.hbm [shape: f32[16,32], index: 0, kind: input, shape index: {}]   ;;  %s1921_s1 = inlined_call_operand.hbm [shape: f32[32,128], index: 1, kind: input, shape index: {}]   ;;  %s1922_s2 = inlined_call_operand.vmem [shape: f32[1,128], index: 2, kind: input, shape index: {}]   ;;  %s1923_s3 = inlined_call_operand.vmem [shape: f32[1,128], index: 3, kind: input, shape index: {}]   ;;  %s1924_s4 = inlined_call_operand.vmem [shape: f32[1,128], index: 4, kind: input, shape index: {}]   ;;  %s1925_s5 = inlined_call_operand.hbm [shape: f32[128,128], index: 5, kind: input, shape index: {}]   ;;  %s1926_s6 = inlined_call_operand.vmem [shape: f32[1,128], index: 6, kind: input, shape index: {}]   ;;  %s1927_s7 = inlined_call_operand.vmem [shape: f32[1,128], index: 7, kind: input, shape index: {}]   ;;  %s1928_s8 = inlined_call_operand.vmem [shape: f32[1,128], index: 8, kind: input, shape index: {}]   ;;  %s1929_s9 = inlined_call_operand.hbm [shape: f32[128,128], index: 9, kind: input, shape index: {}]   ;;  %s1930_s10 = inlined_call_operand.vmem [shape: f32[1,128], index: 10, kind: input, shape index: {}]   ;;  %s1931_s11 = inlined_call_operand.hbm [shape: f32[16,128], index: 11, kind: output, shape index: {0}]   ;;  %s1932_s12 = inlined_call_operand.hbm [shape: f32[16,128], index: 12, kind: output, shape index: {1}]  }
   0x1   :  { %1940 = sst [smem:[#allocation20_spill]] %s1920_s0 }
   0x2   :  { %1941 = sst [smem:[#allocation21_spill]] %s1928_s8 }
   0x3   :  { %1942 = sst [smem:[#allocation22_spill]] %s1930_s10 }
   0x4   :  { %1943 = sst [smem:[#allocation23_spill]] %s1931_s11 }
   0x5   :  { %1944 = sst [smem:[#allocation24_spill]] %s1932_s12 }
   0x6   :  { %18 = vsyncpa [#allocation3], 0 }
   0x7   :  { %20 = vsyncpa [#allocation3 + $0x1], 0 }
   0x8   :  { %21 = vsyncpa [#allocation6], 0 }
   0x9   :  { %22 = vsyncpa [#allocation9], 0 }
   0xa   :  { %23 = vsyncpa [#allocation4], 0 }
   0xb   :  { %25 = vsyncpa [#allocation4 + $0x1], 0 }
   0xc   :  { %26 = vsyncpa [#allocation12], 0 }
   0xd   :  { %28 = vsyncpa [#allocation12 + $0x1], 0  ;;  %s1576_s21 = smov 0   ;;  %s1578_s22 = smov 0  }
   0xe   :  { %s1580_s23 = smov 0   ;;  %s1582_s24 = smov 0  }
   0xf LB: > { %1945 = sst [smem:[#allocation18_spill]] %s1486_s21  ;;  %s1597_s25 = sadd.s32 4294967295, %s1498_s24   ;;  %s1498_s24 = sphi %s1582_s24, %s1974_s24   ;;  %s1494_s23 = sphi %s1580_s23, %s1973_s23   ;;  %s1490_s22 = sphi %s1578_s22, %s1972_s22   ;;  %s1486_s21 = sphi %s1576_s21, %s1971_s21  }
  0x10   : > { %s984_s26 = sadd.s32 4294967294, %s1498_s24   ;;  %p54_p0 = scmp.ne.s32.totalorder %s1490_s22, %s1486_s21 }
  0x11   : > { %p1935_p1 = scmp.eq.s32.totalorder %s1597_s25, 0  ;;  %p294_p3 = scmp.eq.s32.totalorder %s984_s26, 1 }
  0x12   : > { %p985_p5 = scmp.ge.s32.totalorder %s1498_s24, 1  ;;  %p327_p7 = scmp.lt.s32.totalorder %s1498_s24, 3 }
  0x13   : > { %p1606_p4 = por %p1935_p1, %p54_p0  ;;  %p1611_p6 = por %p294_p3, %p54_p0 }
  0x14   : > { %p1616_p8 = pnand %p985_p5, %p327_p7  ;;  %s1500_s30 = smov [#allocation5]  }
  0x15   : > { %s1946_s27 = scalar_select %p1606_p4, 1, 0 }
  0x16   : > { %s1947_s28 = scalar_select %p1611_p6, 1, 0 }
  0x17   : > { %s1949_s29 = scalar_select %p1616_p8, 1, 0 }
  0x18   : > { %1948 = sst [smem:[#allocation19_spill]] %s1947_s28  ;;  %s339_s13 = sshll.u32 %s1500_s30, 4  ;;  %s1620_s13 = int_to_ptr.vmem [resolvable:$true] %s339_s13 }
  0x19   : > { %p1205_p9 = pneg %p1616_p8  ;;  %s1501_s15 = smov [#allocation7]  }
  0x1a   : > { %s361_s16 = sshll.u32 %s1501_s15, 4  ;;  %s1502_s17 = smov [#allocation8]   ;;  %s1631_s16 = int_to_ptr.vmem [resolvable:$true] %s361_s16 }
  0x1b   : > { %p1627_p11 = pnand %p1205_p9, %p1935_p1  ;;  %s1633_s18 = sshll.u32 %s1502_s17, 4  ;;  %s384_s18 = int_to_ptr.vmem [resolvable:$true] %s1633_s18 }
  0x1c   : > { %s1278_s26 = scalar_lea.hbm %s1921_s1, 512 }
  0x1d   : > { %p1279_p12 = scmp.ne.s32.totalorder %s1921_s1, %s1278_s26  ;;  %p1643_p13 = pneg %p1627_p11 }
  0x1e   : > { %p1285_p5 = scmp.lt.u32.totalorder %s1278_s26, %s1921_s1 }
  0x1f   : > { %p1281_p0 = pnand %p1643_p13, %p1279_p12 }
  0x21   : > { %p1282_p3 = pneg %p1281_p0 }
  0x23   : > { %p1287_p7 = pnand %p1285_p5, %p1282_p3 }
  0x25   : > { %1290 = shalt.err (!%p1287_p7)
}
  0x26   : > { %s1291_s28 = scalar_lea.vmem %s1620_s13, 512  ;;  %p1299_p2 = scmp.lt.s32.totalorder %s1620_s13, %s1620_s13 }
  0x27   : > { %p1292_p9 = scmp.ne.s32.totalorder %s1620_s13, %s1291_s28  ;;  %p1300_p6 = scmp.lt.s32.totalorder %s1291_s28, %s1291_s28 }
  0x29   : > { %p1294_p10 = pnand %p1292_p9, %p1643_p13  ;;  %p1301_p12 = por %p1300_p6, %p1299_p2 }
  0x2b   : > { %p1295_p1 = pneg %p1294_p10 }
  0x2d   : > { %p1302_p0 = pnand %p1301_p12, %p1295_p1 }
  0x2f   : > { %1305 = shalt.err (!%p1302_p0)
}
  0x30   : > { %s1503_s19 = smov 128   ;;  %s1504_s20 = smov 8  }
  0x31   : > { %1208 = dma.hbm_to_vmem [thread:$0]  (!%p1627_p11), %s1921_s1, 512, %s1620_s13, [#allocation6], %s1503_s19, %s1503_s19, %s1504_s20  }
  0x32   : > { %s1306_s28 = scalar_lea.hbm %s1925_s5, 2048 }
  0x33   : > { %p1307_p1 = scmp.ne.s32.totalorder %s1925_s5, %s1306_s28  ;;  %p1313_p10 = scmp.lt.u32.totalorder %s1306_s28, %s1925_s5 }
  0x35   : > { %p1309_p2 = pnand %p1307_p1, %p1643_p13 }
  0x37   : > { %p1310_p6 = pneg %p1309_p2 }
  0x39   : > { %p1315_p3 = pnand %p1313_p10, %p1310_p6 }
  0x3b   : > { %1318 = shalt.err (!%p1315_p3)
}
  0x3c   : > { %s1319_s13 = scalar_lea.vmem %s1631_s16, 2048  ;;  %p1327_p12 = scmp.lt.s32.totalorder %s1631_s16, %s1631_s16 }
  0x3d   : > { %p1320_p5 = scmp.ne.s32.totalorder %s1631_s16, %s1319_s13  ;;  %p1328_p0 = scmp.lt.s32.totalorder %s1319_s13, %s1319_s13 }
  0x3f   : > { %p1322_p7 = pnand %p1320_p5, %p1643_p13  ;;  %p1329_p1 = por %p1328_p0, %p1327_p12 }
  0x41   : > { %p1323_p9 = pneg %p1322_p7 }
  0x43   : > { %p1330_p2 = pnand %p1329_p1, %p1323_p9 }
  0x45   : > { %1333 = shalt.err (!%p1330_p2)
}
  0x46   : > { %1211 = dma.hbm_to_vmem [thread:$0]  (!%p1627_p11), %s1925_s5, 2048, %s1631_s16, [#allocation6], %s1503_s19, %s1503_s19, %s1504_s20  }
  0x47   : > { %s1334_s26 = scalar_lea.hbm %s1929_s9, 2048 }
  0x48   : > { %p1335_p6 = scmp.ne.s32.totalorder %s1929_s9, %s1334_s26  ;;  %p1341_p5 = scmp.lt.u32.totalorder %s1334_s26, %s1929_s9 }
  0x4a   : > { %p1337_p10 = pnand %p1335_p6, %p1643_p13 }
  0x4c   : > { %p1338_p3 = pneg %p1337_p10 }
  0x4e   : > { %p1343_p7 = pnand %p1341_p5, %p1338_p3 }
  0x50   : > { %1346 = shalt.err (!%p1343_p7)
}
  0x51   : > { %s1347_s13 = scalar_lea.vmem %s384_s18, 2048  ;;  %p1355_p1 = scmp.lt.s32.totalorder %s384_s18, %s384_s18 }
  0x52   : > { %p1348_p9 = scmp.ne.s32.totalorder %s384_s18, %s1347_s13  ;;  %p1356_p2 = scmp.lt.s32.totalorder %s1347_s13, %s1347_s13 }
  0x54   : > { %p1350_p12 = pnand %p1348_p9, %p1643_p13  ;;  %p1357_p4 = por %p1356_p2, %p1355_p1 }
  0x56   : > { %p1351_p0 = pneg %p1350_p12 }
  0x58   : > { %p1358_p8 = pnand %p1357_p4, %p1351_p0 }
  0x5a   : > { %1361 = shalt.err (!%p1358_p8)
}
  0x5b   : > { %1214 = dma.hbm_to_vmem [thread:$0]  (!%p1627_p11), %s1929_s9, 2048, %s384_s18, [#allocation9], %s1503_s19, %s1503_s19, %s1504_s20  }
  0x5c   : > { %s1716_s21 = sadd.s32 1, %s1498_s24   ;;  %s41_s10 = sadd.s32 1, %s1494_s23 }
  0x5d   : > { %s38_s14 = ssub.s32 %s1498_s24, %s1716_s21  ;;  %p48_p8 = scmp.ne.s32.totalorder %s1494_s23, %s1490_s22 }
  0x5e   : > { %p39_p4 = scmp.eq.s32.totalorder %s38_s14, 0  ;;  %p49_p13 = scmp.eq.s32.totalorder %s1498_s24, 0 }
  0x5f   : > { %p1229_p6 = scmp.lt.s32.totalorder %s1498_s24, 2  ;;  %p1952_p3 = scmp.eq.s32.totalorder %s1597_s25, 1 }
  0x60   : > { %s1726_s11 = scalar_select %p39_p4, %s1494_s23, %s41_s10  }
  0x61   : > { %p50_p10 = por %p49_p13, %p48_p8  ;;  %p1730_p5 = por %p1952_p3, %p48_p8 }
  0x62   : > { %s400_s26 = sand.u32 1, %s1494_s23   ;;  %s991_s30 = sshll.u32 %s1498_s24, 7 }
  0x63   : > { %s990_s18 = sshll.u32 %s400_s26, 3  ;;  %s1954_s0 = sld [smem:[#allocation20_spill]] }
  0x64   : > { %s404_s17 = scalar_lea.vmem [#allocation2], %s990_s18  ;;  %p1741_p11 = pnand %p1229_p6, %p50_p10 }
  0x65   : > { %s411_s28 = sshll.u32 %s404_s17, 4  ;;  %s401_s16 = scalar_lea.sflag [#allocation3], %s400_s26  ;;  %s1745_s28 = int_to_ptr.vmem [resolvable:$true] %s411_s28 }
  0x66   : > { %p1364_p9 = pneg %p1741_p11 }
  0x69   : > { %s1739_s15 = scalar_lea.hbm %s1954_s0, %s991_s30  ;;  %s1367_s30 = scalar_lea.hbm %s1954_s0, 256 }
  0x6a   : > { %s1362_s8 = scalar_lea.hbm %s1739_s15, 128  ;;  %p1368_p1 = scmp.lt.u32.totalorder %s1739_s15, %s1954_s0 }
  0x6b   : > { %p1363_p7 = scmp.ne.s32.totalorder %s1739_s15, %s1362_s8  ;;  %p1369_p2 = scmp.lt.u32.totalorder %s1367_s30, %s1362_s8 }
  0x6c   : > { %p1371_p8 = scmp.lt.u32.totalorder %s1362_s8, %s1739_s15 }
  0x6d   : > { %p1365_p12 = pnand %p1364_p9, %p1363_p7  ;;  %p1370_p4 = por %p1369_p2, %p1368_p1 }
  0x6f   : > { %p1366_p0 = pneg %p1365_p12  ;;  %p1372_p13 = por %p1371_p8, %p1370_p4 }
  0x71   : > { %p1373_p6 = pnand %p1372_p13, %p1366_p0 }
  0x73   : > { %1376 = shalt.err (!%p1373_p6)
}
  0x74   : > { %s1377_s26 = scalar_lea.vmem %s1745_s28, 128  ;;  %s1505_s20 = smov [#allocation2]  }
  0x75   : > { %p1378_p10 = scmp.ne.s32.totalorder %s1745_s28, %s1377_s26  ;;  %s1382_s17 = sshll.u32 %s1505_s20, 4  ;;  %s1383_s17 = int_to_ptr.vmem [resolvable:$false] %s1382_s17 }
  0x76   : > { %s1384_s14 = scalar_lea.vmem %s1383_s17, 256  ;;  %p1385_p12 = scmp.lt.s32.totalorder %s1745_s28, %s1383_s17 }
  0x77   : > { %p1380_p3 = pnand %p1378_p10, %p1364_p9  ;;  %p1386_p1 = scmp.lt.s32.totalorder %s1384_s14, %s1377_s26 }
  0x79   : > { %p1381_p7 = pneg %p1380_p3  ;;  %p1387_p2 = por %p1386_p1, %p1385_p12 }
  0x7b   : > { %p1388_p4 = pnand %p1387_p2, %p1381_p7 }
  0x7d   : > { %1391 = shalt.err (!%p1388_p4)
}
  0x7e   : > { %1218 = dma.hbm_to_vmem [thread:$0]  (!%p1741_p11), %s1739_s15, 128, %s1745_s28, %s401_s16  }
  0x7f   : > { %p1956_p0 = scmp.ne.s32.totalorder %s1949_s29, 0 }
  0x80   : > { %s1775_s8 = sand.u32 (!%p1956_p0), 1, %s1490_s22   ;;  %p1957_p9 = scmp.ne.s32.totalorder (!%p1956_p0), %s1946_s27, 0 }
  0x81   : > { %420 = sbr.rel (%p1956_p0) target bundleno = 1439 (0x59f), region = 64  ;;  %s1778_s10 = sshll.u32 (!%p1956_p0), %s1775_s8, 3 }
  0x82   : > { %s423_s30 = scalar_lea.sflag (!%p1956_p0), [#allocation3], %s1775_s8  ;;  %s426_s18 = scalar_lea.vmem (!%p1956_p0), [#allocation2], %s1778_s10 }
  0x88   : > { %1465 = dma.done.wait (%p1957_p9), %s423_s30, 128  }
  0x89   : > { %1467 = vsyncadd (%p1957_p9), %s423_s30, 4294967168  ;;  %p1958_p11 = scmp.eq.s32.totalorder %s1597_s25, 0 }
  0x8b   : > { %1469 = dma.done.wait (%p1958_p11), [#allocation6], 2560   ;;  %p1959_p8 = pmov %p1958_p11 }
  0x8d   : > { %1471 = vsyncadd (%p1959_p8), [#allocation6], 4294964736  ;;  %p1960_p13 = pmov %p1959_p8 }
  0x8e   : > { %p1961_p6 = pmov %p1959_p8 }
  0x8f   : > { %1473 = dma.done.wait (%p1960_p13), [#allocation9], 2048  }
  0x90   : > { %1475 = vsyncadd (%p1961_p6), [#allocation9], 4294965248  ;;  %v1506_v0 = vmov 0.0|0.0   ;;  %vm1507_vm0 = vmmov 0   ;;  %v1508_v1 = vmov 0.0   ;;  %v488_v2 = vld [vmem:[#allocation5] sm:$0xff]  ;;  %v484_v19 = vlaneseq }
  0x91   : > { %1133 = vmatprep.subr.bf16.mxu0 %v1506_v0  ;;  %1060 = vmatprep.mubr.msk.f32.mxu0 %vm1507_vm0, %v1508_v1  ;;  %v489_v3 = vld [vmem:[#allocation5 + $0x8] sm:$0xff]  ;;  %v490_v4 = vld [vmem:[#allocation5 + $0x10] sm:$0xff]  ;;  %v491_v6 = vld [vmem:[#allocation5 + $0x18] sm:$0xff]  ;;  %vm499_vm1 = vcmask 261120   ;;  %s483_s27 = scalar_lea.vmem [#allocation11], %s1778_s10  ;;  %s1009_s29 = sshll.u32 %s1597_s25, 7 }
  0x92   : > { %1139 = vmatprep.subr.bf16.mxu1 %v1506_v0  ;;  %1095 = vmatprep.mubr.msk.f32.mxu1 %vm1507_vm0, %v1508_v1  ;;  %v1134_v5 = vpack.c.bf16 %v489_v3, %v488_v2  ;;  %v1137_v7 = vpack.c.bf16 %v491_v6, %v490_v4  ;;  %v487_v8 = vld [vmem:[%s426_s18] sm:$0xff]  ;;  %v604_v13 = vld [vmem:[#allocation7] sm:$0xff]  ;;  %v605_v14 = vld [vmem:[#allocation7 + $0x8] sm:$0xff]  ;;  %v1806_v20 = vand.u32 127, %v484_v19  ;;  %s1962_s18 = sld [smem:[#allocation21_spill]]  ;;  %s1963_s13 = sld [smem:[#allocation24_spill]] }
  0x93   : > { %v999_v9 = vld [vmem:[%s1922_s2] ss:$0 sm:$0xff]  ;;  %v1140_v16 = vpack.c.bf16 %v605_v14, %v604_v13  ;;  %v607_v17 = vld [vmem:[#allocation7 + $0x18] sm:$0xff]  ;;  %v608_v26 = vld [vmem:[#allocation7 + $0x20] sm:$0xff]  ;;  %s853_s19 = sshll.u32 %s483_s27, 4  ;;  %s827_s26 = scalar_lea.sflag [#allocation12], %s1775_s8  ;;  %s854_s19 = int_to_ptr.vmem [resolvable:$true] %s853_s19 }
  0x94   : > { %1135 = vmatpush3.bf16.msra.mxu0 %v1134_v5  ;;  %v606_v15 = vld [vmem:[#allocation7 + $0x10] sm:$0xff]  ;;  %vm486_vm2 = vcmp.lt.s32.totalorder %v1806_v20, 32  ;;  %v609_v27 = vld [vmem:[#allocation7 + $0x28] sm:$0xff]  ;;  %v611_v30 = vld [vmem:[#allocation7 + $0x38] sm:$0xff]  ;;  %s1392_s20 = scalar_lea.vmem %s854_s19, 128  ;;  %s1509_s17 = smov [#allocation11]  }
  0x95   : > { %1136 = vmatprep.subr.bf16.mxu0 %v1506_v0  ;;  %1141 = vmatpush3.bf16.msra.mxu1 %v1140_v16  ;;  %v1143_v18 = vpack.c.bf16 %v607_v17, %v606_v15  ;;  %v1146_v28 = vpack.c.bf16 %v609_v27, %v608_v26  ;;  %v610_v29 = vld [vmem:[#allocation7 + $0x30] sm:$0xff]  ;;  %v612_v32 = vld [vmem:[#allocation7 + $0x40] sm:$0xff]  ;;  %v613_v33 = vld [vmem:[#allocation7 + $0x48] sm:$0xff]  ;;  %p1393_p10 = scmp.ne.s32.totalorder %s854_s19, %s1392_s20  ;;  %s1396_s14 = sshll.u32 %s1509_s17, 4  ;;  %s1397_s14 = int_to_ptr.vmem [resolvable:$false] %s1396_s14 }
  0x96   : > { %1142 = vmatprep.subr.bf16.mxu1 %v1506_v0  ;;  %v1149_v31 = vpack.c.bf16 %v611_v30, %v610_v29  ;;  %v1152_v34 = vpack.c.bf16 %v613_v33, %v612_v32  ;;  %v614_v35 = vld [vmem:[#allocation7 + $0x50] sm:$0xff]  ;;  %v615_v36 = vld [vmem:[#allocation7 + $0x58] sm:$0xff]  ;;  %v616_v38 = vld [vmem:[#allocation7 + $0x60] sm:$0xff]  ;;  %s1398_s30 = scalar_lea.vmem %s1397_s14, 256  ;;  %p1399_p12 = scmp.lt.s32.totalorder %s854_s19, %s1397_s14 }
  0x97   : > { %v1155_v37 = vpack.c.bf16 %v615_v36, %v614_v35  ;;  %v617_v39 = vld [vmem:[#allocation7 + $0x68] sm:$0xff]  ;;  %v618_v41 = vld [vmem:[#allocation7 + $0x70] sm:$0xff]  ;;  %v619_v42 = vld [vmem:[#allocation7 + $0x78] sm:$0xff]  ;;  %p1394_p3 = pnand %p1393_p10, %p1730_p5  ;;  %p1400_p1 = scmp.lt.s32.totalorder %s1398_s30, %s1392_s20 }
  0x98   : > { %1138 = vmatpush3.bf16.msra.mxu0 %v1137_v7  ;;  %v1158_v40 = vpack.c.bf16 %v617_v39, %v616_v38  ;;  %v1161_v43 = vpack.c.bf16 %v619_v42, %v618_v41  ;;  %v1001_v48 = vld [vmem:[%s1923_s3] ss:$0 sm:$0xff]  ;;  %v727_v58 = vld [vmem:[#allocation8] sm:$0xff]  ;;  %v728_v59 = vld [vmem:[#allocation8 + $0x8] sm:$0xff]  ;;  %s1847_s16 = scalar_lea.hbm %s1963_s13, %s1009_s29 }
  0x99   : > { %1163 = vmatprep.subr.bf16.mxu0 %v1506_v0  ;;  %1144 = vmatpush3.bf16.msra.mxu1 %v1143_v18  ;;  %v1002_v50 = vld [vmem:[%s1924_s4] ss:$0 sm:$0xff]  ;;  %v1164_v61 = vpack.c.bf16 %v728_v59, %v727_v58  ;;  %v730_v62 = vld [vmem:[#allocation8 + $0x18] sm:$0xff]  ;;  %v731_v6 = vld [vmem:[#allocation8 + $0x20] sm:$0xff]  ;;  %p1395_p7 = pneg %p1394_p3  ;;  %p1401_p2 = por %p1400_p1, %p1399_p12 }
  0x9a   : > { %1145 = vmatprep.subr.bf16.mxu1 %v1506_v0  ;;  %v1003_v54 = vld [vmem:[%s1926_s6] ss:$0 sm:$0xff]  ;;  %v732_v7 = vld [vmem:[#allocation8 + $0x28] sm:$0xff]  ;;  %v738_v16 = vld [vmem:[#allocation8 + $0x58] sm:$0xff] }
  0x9b   : > { %1061 = vmatmul.mubr.msk.f32.vlgmr.msra.gmra.mrb[0].mxu0 %vm499_vm1, %v487_v8  ;;  %v729_v60 = vld [vmem:[#allocation8 + $0x10] sm:$0xff]  ;;  %v1170_v8 = vpack.c.bf16 %v732_v7, %v731_v6  ;;  %v736_v13 = vld [vmem:[#allocation8 + $0x48] sm:$0xff]  ;;  %v739_v18 = vld [vmem:[#allocation8 + $0x60] sm:$0xff]  ;;  %p1402_p4 = pnand %p1401_p2, %p1395_p7 }
  0x9c   : > { %1130 = vmatprep.mubr.msk.f32.mxu0 %vm1507_vm0, %v1508_v1  ;;  %1165 = vmatpush3.bf16.msra.mxu0 %v1164_v61  ;;  %v1167_v63 = vpack.c.bf16 %v730_v62, %v729_v60  ;;  %v737_v15 = vld [vmem:[#allocation8 + $0x50] sm:$0xff]  ;;  %v740_v19 = vld [vmem:[#allocation8 + $0x68] sm:$0xff] }
  0x9d   : > { %1147 = vmatpush3.bf16.msra.mxu1 %v1146_v28  ;;  %1166 = vmatprep.subr.bf16.mxu0 %v1506_v0  ;;  %v1179_v17 = vpack.c.bf16 %v738_v16, %v737_v15  ;;  %v1182_v20 = vpack.c.bf16 %v740_v19, %v739_v18  ;;  %v1004_v28 = vld [vmem:[%s1927_s7] ss:$0 sm:$0xff] }
  0x9e   : > { %1148 = vmatprep.subr.bf16.mxu1 %v1506_v0  ;;  %v1005_v30 = vld [vmem:[%s1962_s18] ss:$0 sm:$0xff] }
  0xa0   : > { %1168 = vmatpush3.bf16.msra.mxu0 %v1167_v63 }
  0xa1   : > { %1150 = vmatpush3.bf16.msra.mxu1 %v1149_v31  ;;  %1169 = vmatprep.subr.bf16.mxu0 %v1506_v0 }
  0xa2   : > { %1151 = vmatprep.subr.bf16.mxu1 %v1506_v0 }
  0xa4   : > { %1171 = vmatpush3.bf16.msra.mxu0 %v1170_v8 }
  0xa5   : > { %1153 = vmatpush3.bf16.msra.mxu1 %v1152_v34  ;;  %1172 = vmatprep.subr.bf16.mxu0 %v1506_v0 }
  0xa6   : > { %1154 = vmatprep.subr.bf16.mxu1 %v1506_v0 }
  0xa9   : > { %1156 = vmatpush3.bf16.msra.mxu1 %v1155_v37 }
  0xaa   : > { %1157 = vmatprep.subr.bf16.mxu1 %v1506_v0 }
  0xad   : > { %1159 = vmatpush3.bf16.msra.mxu1 %v1158_v40 }
  0xae   : > { %1160 = vmatprep.subr.bf16.mxu1 %v1506_v0 }
  0xb1   : > { %1162 = vmatpush3.bf16.msra.mxu1 %v1161_v43 }
 0x16e   : > { %v569_v10 = vpop.f32.mrb[0].mxu0 }
 0x16f   : > { %v570_v11 = vadd.f32 %v999_v9, %v569_v10  ;;  %v1062_v12 = vpop.f32.mrb[1].mxu0  ;;  %v733_v9 = vld [vmem:[#allocation8 + $0x30] sm:$0xff]  ;;  %v734_v10 = vld [vmem:[#allocation8 + $0x38] sm:$0xff] }
 0x170   : > { %v735_v12 = vld [vmem:[#allocation8 + $0x40] sm:$0xff] }
 0x171   : > { %575 = vadd.xlane.f32.xlu0 %v570_v11  ;;  %v1176_v14 = vpack.c.bf16 %v736_v13, %v735_v12 }
 0x1fe   : > { %v576_v21 = vpop.xlane.xlu0 %575 }
 0x1ff   : > { %v577_v22 = vmul.f32 0.03125, %v576_v21  ;;  %v741_v21 = vld [vmem:[#allocation8 + $0x70] sm:$0xff] }
 0x201   : > { %v578_v23 = vsub.f32 %v570_v11, %v577_v22  ;;  %v1173_v11 = vpack.c.bf16 %v734_v10, %v733_v9  ;;  %v742_v22 = vld [vmem:[#allocation8 + $0x78] sm:$0xff] }
 0x203   : > { %v581_v24 = vsel %vm486_vm2, %v578_v23, 0.0  ;;  %1174 = vmatpush3.bf16.msra.mxu0 %v1173_v11  ;;  %v1185_v23 = vpack.c.bf16 %v742_v22, %v741_v21 }
 0x204   : > { %v582_v25 = vmul.f32 %v581_v24, %v581_v24  ;;  %1175 = vmatprep.subr.bf16.mxu0 %v1506_v0 }
 0x206   : > { %583 = vadd.xlane.f32.xlu0 %v582_v25 }
 0x207   : > { %1177 = vmatpush3.bf16.msra.mxu0 %v1176_v14 }
 0x208   : > { %1178 = vmatprep.subr.bf16.mxu0 %v1506_v0 }
 0x20b   : > { %1180 = vmatpush3.bf16.msra.mxu0 %v1179_v17 }
 0x20c   : > { %1181 = vmatprep.subr.bf16.mxu0 %v1506_v0 }
 0x20f   : > { %1183 = vmatpush3.bf16.msra.mxu0 %v1182_v20 }
 0x210   : > { %1184 = vmatprep.subr.bf16.mxu0 %v1506_v0 }
 0x213   : > { %1186 = vmatpush3.bf16.msra.mxu0 %v1185_v23 }
 0x293   : > { %v584_v44 = vpop.xlane.xlu0 %583 }
 0x294   : > { %v585_v45 = vmul.f32 0.03125, %v584_v44 }
 0x296   : > { %v586_v46 = vadd.f32 1e-05, %v585_v45 }
 0x298   : > { %1274 = vrsqrt.f32 %v586_v46 }
 0x2a2   : > { %v1275_v47 = vpop.eup %1274 }
 0x2a3   : > { %v588_v49 = vmul.f32 %v1275_v47, %v581_v24 }
 0x2a5   : > { %v595_v51 = vmul.f32 %v1001_v48, %v588_v49 }
 0x2a7   : > { %v602_v52 = vadd.f32 %v1002_v50, %v595_v51 }
 0x2a9   : > { %v603_v53 = vmax.f32 %v602_v52, 0.0 }
 0x2ab   : > { %1096 = vmatmul.mubr.f32.vlgmr.msra.gmra.mrb[0].mxu1 %v603_v53 }
 0x37e   : > { %v693_v55 = vpop.f32.mrb[0].mxu1 }
 0x37f   : > { %v694_v56 = vadd.f32 %v1003_v54, %v693_v55  ;;  %v1097_v57 = vpop.f32.mrb[1].mxu1 }
 0x381   : > { %699 = vadd.xlane.f32.xlu1 %v694_v56 }
 0x40e   : > { %v700_v1 = vpop.xlane.xlu1 %699 }
 0x40f   : > { %v701_v2 = vmul.f32 0.03125, %v700_v1 }
 0x411   : > { %v702_v3 = vsub.f32 %v694_v56, %v701_v2 }
 0x413   : > { %v703_v4 = vsel %vm486_vm2, %v702_v3, 0.0 }
 0x414   : > { %v704_v5 = vmul.f32 %v703_v4, %v703_v4 }
 0x416   : > { %705 = vadd.xlane.f32.xlu1 %v704_v5 }
 0x4a3   : > { %v706_v24 = vpop.xlane.xlu1 %705 }
 0x4a4   : > { %v707_v25 = vmul.f32 0.03125, %v706_v24 }
 0x4a6   : > { %v708_v26 = vadd.f32 1e-05, %v707_v25 }
 0x4a8   : > { %1276 = vrsqrt.f32 %v708_v26 }
 0x4b2   : > { %v1277_v27 = vpop.eup %1276 }
 0x4b3   : > { %v710_v29 = vmul.f32 %v1277_v27, %v703_v4 }
 0x4b5   : > { %v717_v0 = vmul.f32 %v1004_v28, %v710_v29 }
 0x4b7   : > { %v724_v31 = vadd.f32 %v1005_v30, %v717_v0 }
 0x4b9   : > { %v725_v32 = vmax.f32 %v724_v31, 0.0 }
 0x4bb   : > { %1131 = vmatmul.mubr.f32.vlgmr.msra.gmra.mrb[2].mxu0 %v725_v32  ;;  %726 = vst [vmem:[%s483_s27] sm:$0xff] %v725_v32 }
 0x4bc   : > { %1405 = shalt.err (!%p1402_p4)
}
 0x4bd   : > { %s1406_s18 = scalar_lea.hbm %s1847_s16, 128  ;;  %s1410_s28 = scalar_lea.hbm %s1963_s13, 256 }
 0x4be   : > { %p1407_p0 = scmp.ne.s32.totalorder %s1847_s16, %s1406_s18  ;;  %p1411_p8 = scmp.lt.u32.totalorder %s1847_s16, %s1963_s13 }
 0x4bf   : > { %p1412_p13 = scmp.lt.u32.totalorder %s1410_s28, %s1406_s18  ;;  %p1414_p10 = scmp.lt.u32.totalorder %s1406_s18, %s1847_s16 }
 0x4c0   : > { %p1408_p9 = pnand %p1407_p0, %p1730_p5 }
 0x4c1   : > { %p1413_p6 = por %p1412_p13, %p1411_p8 }
 0x4c2   : > { %p1409_p11 = pneg %p1408_p9 }
 0x4c3   : > { %p1415_p3 = por %p1414_p10, %p1413_p6 }
 0x4c5   : > { %p1416_p7 = pnand %p1415_p3, %p1409_p11 }
 0x4c7   : > { %1419 = shalt.err (!%p1416_p7)
}
 0x4c8   : > { %1202 = dma.vmem_to_hbm [thread:$0]  (%p1730_p5), %s854_s19, 128, %s1847_s16, %s827_s26  }
 0x4c9   : > { %s1964_s27 = sld [smem:[#allocation22_spill]]  ;;  %s476_s15 = scalar_lea.vmem [#allocation10], %s1778_s10 }
 0x4ca   : > { %s840_s17 = sshll.u32 %s476_s15, 4  ;;  %s1965_s14 = sld [smem:[#allocation23_spill]]  ;;  %s1878_s17 = int_to_ptr.vmem [resolvable:$true] %s840_s17 }
 0x4cb   : > { %s822_s16 = scalar_lea.sflag [#allocation4], %s1775_s8  ;;  %s1420_s19 = scalar_lea.vmem %s1878_s17, 128 }
 0x4cc   : > { %p1421_p12 = scmp.ne.s32.totalorder %s1878_s17, %s1420_s19  ;;  %s1510_s10 = smov [#allocation10]  }
 0x4cd   : > { %s1424_s26 = sshll.u32 %s1510_s10, 4  ;;  %s1425_s26 = int_to_ptr.vmem [resolvable:$false] %s1424_s26 }
 0x4ce   : > { %p1422_p1 = pnand %p1421_p12, %p1730_p5  ;;  %s1426_s25 = scalar_lea.vmem %s1425_s26, 256 }
 0x4cf   : > { %v1006_v33 = vld [vmem:[%s1964_s27] ss:$0 sm:$0xff]  ;;  %p1427_p4 = scmp.lt.s32.totalorder %s1878_s17, %s1425_s26  ;;  %p1428_p0 = scmp.lt.s32.totalorder %s1426_s25, %s1420_s19 }
 0x4d0   : > { %s1876_s0 = scalar_lea.hbm %s1965_s14, %s1009_s29  ;;  %p1423_p2 = pneg %p1422_p1 }
 0x4d1   : > { %p1429_p9 = por %p1428_p0, %p1427_p4 }
 0x4d3   : > { %p1430_p11 = pnand %p1429_p9, %p1423_p2 }
 0x58e   : > { %v816_v34 = vpop.f32.mrb[2].mxu0 }
 0x58f   : > { %v817_v35 = vadd.f32 %v1006_v33, %v816_v34  ;;  %v1132_v36 = vpop.f32.mrb[3].mxu0 }
 0x591   : > { %820 = vst [vmem:[%s476_s15] sm:$0xff] %v817_v35 }
 0x592   : > { %1433 = shalt.err (!%p1430_p11)
}
 0x593   : > { %s1434_s8 = scalar_lea.hbm %s1876_s0, 128  ;;  %s1438_s30 = scalar_lea.hbm %s1965_s14, 256 }
 0x594   : > { %p1435_p8 = scmp.ne.s32.totalorder %s1876_s0, %s1434_s8  ;;  %p1439_p10 = scmp.lt.u32.totalorder %s1876_s0, %s1965_s14 }
 0x595   : > { %p1440_p3 = scmp.lt.u32.totalorder %s1438_s30, %s1434_s8  ;;  %p1442_p12 = scmp.lt.u32.totalorder %s1434_s8, %s1876_s0 }
 0x596   : > { %p1436_p13 = pnand %p1435_p8, %p1730_p5 }
 0x597   : > { %p1441_p7 = por %p1440_p3, %p1439_p10 }
 0x598   : > { %p1437_p6 = pneg %p1436_p13 }
 0x599   : > { %p1443_p1 = por %p1442_p12, %p1441_p7 }
 0x59b   : > { %p1444_p2 = pnand %p1443_p1, %p1437_p6 }
 0x59d   : > { %1447 = shalt.err (!%p1444_p2)
}
 0x59e   : > { %1201 = dma.vmem_to_hbm [thread:$0]  (%p1730_p5), %s1878_s17, 128, %s1876_s0, %s822_s16  }
 0x59f PF: > { %s1966_s18 = sld [smem:[#allocation18_spill]]  ;;  %s1967_s28 = sld [smem:[#allocation19_spill]] }
 0x5a0   : > { %p1969_p0 = scmp.ge.s32.totalorder %s1498_s24, 2 }
 0x5a5   : > { %s865_s19 = sand.u32 1, %s1966_s18   ;;  %p1968_p4 = scmp.ne.s32.totalorder %s1967_s28, 0 }
 0x5a6   : > { %s866_s10 = scalar_lea.sflag [#allocation4], %s865_s19 }
 0x5a7   : > { %p1220_p9 = pnand %p1969_p0, %p1968_p4 }
 0x5a9   : > { %1477 = dma.done.wait (!%p1220_p9), %s866_s10, 128  }
 0x5aa   : > { %1479 = vsyncadd (!%p1220_p9), %s866_s10, 4294967168  ;;  %s875_s26 = scalar_lea.sflag [#allocation12], %s865_s19 }
 0x5ab   : > { %1481 = dma.done.wait (!%p1220_p9), %s875_s26, 128  }
 0x5ac   : > { %1483 = vsyncadd (!%p1220_p9), %s875_s26, 4294967168  ;;  %s1970_s12 = smov %s1716_s21  ;;  %p31_p5 = scmp.ge.s32.totalorder %s1716_s21, 4  }
 0x5ad   : > { %s1971_s21 = smov %s1490_s22  ;;  %s1972_s22 = smov %s1494_s23 }
 0x5ae   : > { %s1973_s23 = smov %s1726_s11  ;;  %s1974_s24 = smov %s1970_s12 }
 0x5af   :  { %33 = sbr.rel (!%p31_p5) target bundleno = 15 (0xf), region = 138 }
 0x5b6   :  { %880 = vsyncpa [#allocation3], 1 }
 0x5b7   :  { %882 = vsyncpa [#allocation3 + $0x1], 1 }
 0x5b8   :  { %883 = vsyncpa [#allocation6], 1 }
 0x5b9   :  { %884 = vsyncpa [#allocation9], 1 }
 0x5ba   :  { %885 = vsyncpa [#allocation4], 1 }
 0x5bb   :  { %887 = vsyncpa [#allocation4 + $0x1], 1 }
 0x5bc   :  { %888 = vsyncpa [#allocation12], 1 }
 0x5bd   :  { %890 = vsyncpa [#allocation12 + $0x1], 1 }

</bundles_post_ra>
